<compile_context>
chip_gen: v7x
topology: tpu7x:2x2x1
jax: 0.10.0
libtpu: 0.0.40
codegen_flags: <defaults>
</compile_context>

<pallas_src>
import jax
import jax.numpy as jnp
from jax.experimental import pallas as pl
from jax.experimental.pallas import tpu as pltpu


def _round_up(x, m):
    return ((x + m - 1) // m) * m


def _pick_vmem_limit_bytes():
    """Generation-aware scoped-VMEM limit: leave headroom under v7x's 64 MiB
    physical VMEM; use more of v5e/v6e's 128 MiB."""
    try:
        kind = jax.devices()[0].device_kind.lower()
        if "v5" in kind or "v6" in kind:
            return 96 * 1024 * 1024
    except Exception:
        pass
    return 48 * 1024 * 1024


# ---------------------------------------------------------------------------
# Kernels
# ---------------------------------------------------------------------------

def _gating_kernel_fused(x_ref, wcat_ref, bcat_ref, o_ref):
    # x_ref:    (TM, Dp)      input row tile
    # wcat_ref: (Dp, 2*Dp)    [Wg^T | Wt^T], resident across grid steps
    # bcat_ref: (1, 2*Dp)     [bg | bt], float32
    # o_ref:    (TM, Dp)
    dp = x_ref.shape[-1]
    x = x_ref[...]
    # One wide MXU pass (N = 2*Dp), f32 accumulation.
    y = jnp.dot(x, wcat_ref[...], preferred_element_type=jnp.float32) + bcat_ref[...]
    gate = jax.nn.sigmoid(y[:, :dp])          # EUP exp + VPU elementwise
    o_ref[...] = (gate * y[:, dp:]).astype(o_ref.dtype)


def _gating_kernel_ntiled(x_ref, wg_ref, bg_ref, wt_ref, bt_ref, o_ref):
    # Column-tiled variant for large D: per (row tile, column tile) compute both
    # projections restricted to this output-column block.
    x = x_ref[...]
    g = jnp.dot(x, wg_ref[...], preferred_element_type=jnp.float32) + bg_ref[...]
    t = jnp.dot(x, wt_ref[...], preferred_element_type=jnp.float32) + bt_ref[...]
    o_ref[...] = (jax.nn.sigmoid(g) * t).astype(o_ref.dtype)


# ---------------------------------------------------------------------------
# One-time weight preparation (hoisted out of the forward hot path)
# ---------------------------------------------------------------------------

def prepare_gating_params(w_gate, b_gate, w_trans, b_trans, compute_dtype=None):
    """Prepare padded / pre-transposed / concatenated parameters ONCE.

    w_*: (D, D) in PyTorch nn.Linear layout (out_features, in_features); b_*: (D,).
    Returns dict with:
      w_cat: (Dp, 2*Dp) = [Wg^T | Wt^T]  (compute dtype, lane-padded)
      b_cat: (1, 2*Dp)  = [bg | bt]      (float32)
    """
    w_gate = jnp.asarray(w_gate)
    w_trans = jnp.asarray(w_trans)
    b_gate = jnp.asarray(b_gate)
    b_trans = jnp.asarray(b_trans)
    D = w_gate.shape[0]
    Dp = _round_up(D, 128)
    dt = compute_dtype if compute_dtype is not None else w_gate.dtype

    pad2 = ((0, Dp - D), (0, Dp - D))
    wg_t = jnp.pad(w_gate.T, pad2)            # y = x @ Wg^T + bg
    wt_t = jnp.pad(w_trans.T, pad2)
    w_cat = jnp.concatenate([wg_t, wt_t], axis=1).astype(dt)            # (Dp, 2*Dp)

    bg_p = jnp.pad(b_gate, (0, Dp - D))
    bt_p = jnp.pad(b_trans, (0, Dp - D))
    b_cat = jnp.concatenate([bg_p, bt_p]).reshape(1, 2 * Dp).astype(jnp.float32)

    return {"w_cat": w_cat, "b_cat": b_cat, "dim": D, "dim_padded": Dp}


# ---------------------------------------------------------------------------
# Forward
# ---------------------------------------------------------------------------

_RESIDENT_WEIGHT_BUDGET = 24 * 1024 * 1024   # W_cat bytes kept resident in VMEM
_ROW_TILE_BUDGET = 4 * 1024 * 1024           # bytes per x row tile (double-buffered)


def _resident_spec(block_shape, index_map, single_buffer):
    if single_buffer:
        # Constant-index operands don't need double buffering.
        return pl.BlockSpec(block_shape, index_map, pipeline_mode=pl.Buffered(1))
    return pl.BlockSpec(block_shape, index_map)


def gating_forward(x, params, *, tm=512):
    """out = sigmoid(x @ Wg^T + bg) * (x @ Wt^T + bt), with prepared params."""
    w_cat, b_cat = params["w_cat"], params["b_cat"]
    D, Dp = params["dim"], params["dim_padded"]
    orig_shape = x.shape
    out_dtype = x.dtype
    assert orig_shape[-1] == D

    x2 = x.reshape(-1, D)
    M = x2.shape[0]
    compute_dtype = w_cat.dtype
    itemsize = jnp.dtype(compute_dtype).itemsize

    # Row tile: sublane-aligned, capped so double-buffered x/out tiles stay modest.
    tm_eff = _round_up(min(tm, _round_up(M, 8)), 8)
    row_cap = max(8, (_ROW_TILE_BUDGET // (Dp * itemsize)) // 8 * 8)
    tm_eff = max(8, min(tm_eff, row_cap))
    Mp = _round_up(M, tm_eff)

    # Aligned fast path: no pad copy when nothing needs padding.
    if Mp != M or Dp != D:
        x_p = jnp.pad(x2, ((0, Mp - M), (0, Dp - D)))
    else:
        x_p = x2
    if x_p.dtype != compute_dtype:
        x_p = x_p.astype(compute_dtype)

    vmem_limit = _pick_vmem_limit_bytes()
    cost = pl.CostEstimate(
        flops=4 * Mp * Dp * Dp,                  # two (Mp x Dp x Dp) GEMMs
        transcendentals=Mp * Dp,                 # sigmoid
        bytes_accessed=(x_p.size * x_p.dtype.itemsize
                        + Mp * Dp * jnp.dtype(out_dtype).itemsize
                        + w_cat.size * itemsize
                        + b_cat.size * 4),
    )

    resident = w_cat.size * itemsize <= _RESIDENT_WEIGHT_BUDGET

    def build(single_buffer):
        if resident:
            # Fused single wide matmul; weights fully resident across grid steps.
            grid = (Mp // tm_eff,)
            return pl.pallas_call(
                _gating_kernel_fused,
                out_shape=jax.ShapeDtypeStruct((Mp, Dp), out_dtype),
                grid_spec=pltpu.PrefetchScalarGridSpec(
                    num_scalar_prefetch=0,
                    grid=grid,
                    in_specs=[
                        pl.BlockSpec((tm_eff, Dp), lambda i: (i, 0)),      # x rows
                        _resident_spec((Dp, 2 * Dp), lambda i: (0, 0), single_buffer),
                        _resident_spec((1, 2 * Dp), lambda i: (0, 0), single_buffer),
                    ],
                    out_specs=pl.BlockSpec((tm_eff, Dp), lambda i: (i, 0)),
                ),
                compiler_params=pltpu.CompilerParams(
                    dimension_semantics=("parallel",),
                    vmem_limit_bytes=vmem_limit,
                ),
                cost_estimate=cost,
            )
        # Large-D fallback: tile the output feature dim; weight tiles are streamed.
        # Same concatenated W_cat is passed twice with offset index_maps so the
        # gate half and transform half each get their own column tile.
        tn = max(t for t in (512, 256, 128) if Dp % t == 0)
        ncol = Dp // tn
        grid = (Mp // tm_eff, ncol)
        return pl.pallas_call(
            _gating_kernel_ntiled,
            out_shape=jax.ShapeDtypeStruct((Mp, Dp), out_dtype),
            grid_spec=pltpu.PrefetchScalarGridSpec(
                num_scalar_prefetch=0,
                grid=grid,
                in_specs=[
                    pl.BlockSpec((tm_eff, Dp), lambda i, j: (i, 0)),        # x rows
                    pl.BlockSpec((Dp, tn), lambda i, j: (0, j)),            # Wg^T cols
                    pl.BlockSpec((1, tn), lambda i, j: (0, j)),             # bg cols
                    pl.BlockSpec((Dp, tn), lambda i, j: (0, j + ncol)),     # Wt^T cols
                    pl.BlockSpec((1, tn), lambda i, j: (0, j + ncol)),      # bt cols
                ],
                out_specs=pl.BlockSpec((tm_eff, tn), lambda i, j: (i, j)),
            ),
            compiler_params=pltpu.CompilerParams(
                dimension_semantics=("parallel", "parallel"),
                vmem_limit_bytes=vmem_limit,
            ),
            cost_estimate=cost,
        )

    args = (x_p, w_cat, b_cat) if resident else (x_p, w_cat, b_cat, w_cat, b_cat)
    try:
        out = build(single_buffer=True)(*args)
    except Exception:
        # Fallback for jax versions without pipeline_mode / Buffered(1) support.
        out = build(single_buffer=False)(*args)

    if Mp != M or Dp != D:
        out = out[:M, :D]
    return out.reshape(orig_shape)


def gating_mechanism(x, w_gate, b_gate, w_trans, b_trans, *, tm=512, compute_dtype=None):
    """One-shot convenience wrapper.  For repeated forwards, call
    prepare_gating_params() once and reuse it with gating_forward()."""
    params = prepare_gating_params(w_gate, b_gate, w_trans, b_trans, compute_dtype)
    return gating_forward(x, params, tm=tm)


def _reference(x, w_gate, b_gate, w_trans, b_trans):
    gate = jax.nn.sigmoid(x @ w_gate.T + b_gate)
    transformed = x @ w_trans.T + b_trans
    return gate * transformed


if __name__ == "__main__":
    # Small shapes consistent with the module: x is (batch, seq, dim), Linear is dim -> dim.
    B, S, DIM = 2, 8, 32

    key = jax.random.PRNGKey(0)
    k0, k1, k2, k3, k4 = jax.random.split(key, 5)

    x = jax.random.normal(k0, (B, S, DIM), dtype=jnp.float32)
    w_gate = jax.random.normal(k1, (DIM, DIM), dtype=jnp.float32) * 0.1   # nn.Linear layout
    b_gate = jax.random.normal(k2, (DIM,), dtype=jnp.float32) * 0.1
    w_trans = jax.random.normal(k3, (DIM, DIM), dtype=jnp.float32) * 0.1
    b_trans = jax.random.normal(k4, (DIM,), dtype=jnp.float32) * 0.1

    params = prepare_gating_params(w_gate, b_gate, w_trans, b_trans)  # one-time prep
    out = gating_forward(x, params)
    out = jax.block_until_ready(out)

    ref = _reference(x, w_gate, b_gate, w_trans, b_trans)
    assert out.shape == (B, S, DIM)
    err = float(jnp.max(jnp.abs(out - ref)))
    assert jnp.allclose(out, ref, atol=1e-4, rtol=1e-4), err

    print("KERNEL_OK")
</pallas_src>

<mosaic_0001>
module attributes {stable_mosaic.version = 11 : i64} {
  func.func @_gating_kernel_fused(%arg0: i32, %arg1: memref<16x128xf32, #tpu.memory_space<vmem>>, %arg2: memref<128x256xf32, #tpu.memory_space<vmem>>, %arg3: memref<1x256xf32, #tpu.memory_space<vmem>>, %arg4: memref<16x128xf32, #tpu.memory_space<vmem>>) attributes {dimension_semantics = [#tpu.dimension_semantics<parallel>], iteration_bounds = array<i64: 1>, scalar_prefetch = 0 : i64, scratch_operands = 0 : i64, tpu.core_type = #tpu.core_type<tc>, window_params = [{transform_indices = @transform_0, window_bounds = array<i64: 16, 128>}, {pipeline_mode = #tpu.pipeline_mode<synchronous>, transform_indices = @transform_1, window_bounds = array<i64: 128, 256>}, {pipeline_mode = #tpu.pipeline_mode<synchronous>, transform_indices = @transform_2, window_bounds = array<i64: 1, 256>}, {transform_indices = @transform_3, window_bounds = array<i64: 16, 128>}]} {
    %c0 = arith.constant 0 : index
    %c0_0 = arith.constant 0 : index
    %0 = vector.load %arg1[%c0, %c0_0] : memref<16x128xf32, #tpu.memory_space<vmem>>, vector<16x128xf32>
    %c0_1 = arith.constant 0 : index
    %c0_2 = arith.constant 0 : index
    %1 = vector.load %arg2[%c0_1, %c0_2] : memref<128x256xf32, #tpu.memory_space<vmem>>, vector<128x256xf32>
    %cst = arith.constant dense<0.000000e+00> : vector<16x256xf32>
    %2 = tpu.matmul %0, %1, %cst {dimension_numbers = #tpu.dot_dimension_numbers<[1], [0], [0], [1], [0, 0, 1, 1], [], []>} : vector<16x128xf32>, vector<128x256xf32>, vector<16x256xf32> -> vector<16x256xf32>
    %c0_3 = arith.constant 0 : index
    %c0_4 = arith.constant 0 : index
    %3 = vector.load %arg3[%c0_3, %c0_4] : memref<1x256xf32, #tpu.memory_space<vmem>>, vector<1x256xf32>
    %4 = vector.broadcast %3 : vector<1x256xf32> to vector<16x256xf32>
    %5 = arith.addf %2, %4 : vector<16x256xf32>
    %6 = vector.extract_strided_slice %5 {offsets = [0, 0], sizes = [16, 128], strides = [1, 1]} : vector<16x256xf32> to vector<16x128xf32>
    %7 = arith.negf %6 : vector<16x128xf32>
    %8 = math.exp %7 : vector<16x128xf32>
    %cst_5 = arith.constant 1.000000e+00 : f32
    %9 = vector.broadcast %cst_5 : f32 to vector<16x128xf32>
    %10 = arith.addf %9, %8 : vector<16x128xf32>
    %11 = arith.divf %9, %10 : vector<16x128xf32>
    %12 = vector.extract_strided_slice %5 {offsets = [0, 128], sizes = [16, 128], strides = [1, 1]} : vector<16x256xf32> to vector<16x128xf32>
    %13 = arith.mulf %11, %12 : vector<16x128xf32>
    %c0_6 = arith.constant 0 : index
    %c0_7 = arith.constant 0 : index
    %14 = vector.load %arg4[%c0_6, %c0_7] : memref<16x128xf32, #tpu.memory_space<vmem>>, vector<16x128xf32>
    tpu.vector_store %arg4[%c0_6, %c0_7], %13 {strides = array<i32>} : memref<16x128xf32, #tpu.memory_space<vmem>>, vector<16x128xf32>,
    return
  }
  func.func @transform_0(%arg0: i32) -> (i32, i32) {
    %c0_i32 = arith.constant 0 : i32
    %c0_i32_0 = arith.constant 0 : i32
    return %arg0, %c0_i32 : i32, i32
  }
  func.func @transform_1(%arg0: i32) -> (i32, i32) {
    %c0_i32 = arith.constant 0 : i32
    %c0_i32_0 = arith.constant 0 : i32
    %c0_i32_1 = arith.constant 0 : i32
    return %c0_i32, %c0_i32_0 : i32, i32
  }
  func.func @transform_2(%arg0: i32) -> (i32, i32) {
    %c0_i32 = arith.constant 0 : i32
    %c0_i32_0 = arith.constant 0 : i32
    %c0_i32_1 = arith.constant 0 : i32
    return %c0_i32, %c0_i32_0 : i32, i32
  }
  func.func @transform_3(%arg0: i32) -> (i32, i32) {
    %c0_i32 = arith.constant 0 : i32
    %c0_i32_0 = arith.constant 0 : i32
    return %arg0, %c0_i32 : i32, i32
  }
}

module attributes {stable_mosaic.version = 11 : i64} {
  func.func @_gating_kernel_fused(%arg0: i32, %arg1: memref<16x128xf32, #tpu.memory_space<vmem>>, %arg2: memref<128x256xf32, #tpu.memory_space<vmem>>, %arg3: memref<1x256xf32, #tpu.memory_space<vmem>>, %arg4: memref<16x128xf32, #tpu.memory_space<vmem>>) attributes {dimension_semantics = [#tpu.dimension_semantics<parallel>], iteration_bounds = array<i64: 1>, scalar_prefetch = 0 : i64, scratch_operands = 0 : i64, tpu.core_type = #tpu.core_type<tc>, window_params = [{transform_indices = @transform_0, window_bounds = array<i64: 16, 128>}, {pipeline_mode = #tpu.pipeline_mode<synchronous>, transform_indices = @transform_1, window_bounds = array<i64: 128, 256>}, {pipeline_mode = #tpu.pipeline_mode<synchronous>, transform_indices = @transform_2, window_bounds = array<i64: 1, 256>}, {transform_indices = @transform_3, window_bounds = array<i64: 16, 128>}]} {
    %c0 = arith.constant 0 : index
    %c0_0 = arith.constant 0 : index
    %0 = vector.load %arg1[%c0, %c0_0] : memref<16x128xf32, #tpu.memory_space<vmem>>, vector<16x128xf32>
    %c0_1 = arith.constant 0 : index
    %c0_2 = arith.constant 0 : index
    %1 = vector.load %arg2[%c0_1, %c0_2] : memref<128x256xf32, #tpu.memory_space<vmem>>, vector<128x256xf32>
    %cst = arith.constant dense<0.000000e+00> : vector<16x256xf32>
    %2 = tpu.matmul %0, %1, %cst {dimension_numbers = #tpu.dot_dimension_numbers<[1], [0], [0], [1], [0, 0, 1, 1], [], []>} : vector<16x128xf32>, vector<128x256xf32>, vector<16x256xf32> -> vector<16x256xf32>
    %c0_3 = arith.constant 0 : index
    %c0_4 = arith.constant 0 : index
    %3 = vector.load %arg3[%c0_3, %c0_4] : memref<1x256xf32, #tpu.memory_space<vmem>>, vector<1x256xf32>
    %4 = vector.broadcast %3 : vector<1x256xf32> to vector<16x256xf32>
    %5 = arith.addf %2, %4 : vector<16x256xf32>
    %6 = vector.extract_strided_slice %5 {offsets = [0, 0], sizes = [16, 128], strides = [1, 1]} : vector<16x256xf32> to vector<16x128xf32>
    %7 = arith.negf %6 : vector<16x128xf32>
    %8 = math.exp %7 : vector<16x128xf32>
    %cst_5 = arith.constant 1.000000e+00 : f32
    %9 = vector.broadcast %cst_5 : f32 to vector<16x128xf32>
    %10 = arith.addf %9, %8 : vector<16x128xf32>
    %11 = arith.divf %9, %10 : vector<16x128xf32>
    %12 = vector.extract_strided_slice %5 {offsets = [0, 128], sizes = [16, 128], strides = [1, 1]} : vector<16x256xf32> to vector<16x128xf32>
    %13 = arith.mulf %11, %12 : vector<16x128xf32>
    %c0_6 = arith.constant 0 : index
    %c0_7 = arith.constant 0 : index
    %14 = vector.load %arg4[%c0_6, %c0_7] : memref<16x128xf32, #tpu.memory_space<vmem>>, vector<16x128xf32>
    tpu.vector_store %arg4[%c0_6, %c0_7], %13 {strides = array<i32>} : memref<16x128xf32, #tpu.memory_space<vmem>>, vector<16x128xf32>,
    return
  }
  func.func @transform_0(%arg0: i32) -> (i32, i32) {
    %c0_i32 = arith.constant 0 : i32
    %c0_i32_0 = arith.constant 0 : i32
    return %arg0, %c0_i32 : i32, i32
  }
  func.func @transform_1(%arg0: i32) -> (i32, i32) {
    %c0_i32 = arith.constant 0 : i32
    %c0_i32_0 = arith.constant 0 : i32
    %c0_i32_1 = arith.constant 0 : i32
    return %c0_i32, %c0_i32_0 : i32, i32
  }
  func.func @transform_2(%arg0: i32) -> (i32, i32) {
    %c0_i32 = arith.constant 0 : i32
    %c0_i32_0 = arith.constant 0 : i32
    %c0_i32_1 = arith.constant 0 : i32
    return %c0_i32, %c0_i32_0 : i32, i32
  }
  func.func @transform_3(%arg0: i32) -> (i32, i32) {
    %c0_i32 = arith.constant 0 : i32
    %c0_i32_0 = arith.constant 0 : i32
    return %arg0, %c0_i32 : i32, i32
  }
}

</mosaic_0001>

<bundles_post_ra>
// kernel: tpu_custom_call.1
= control target key start
LH: loop header
LB: loop body
LE: loop exit
PB: predicated region body
PF: predicated region fallthrough
CT: control target
= control target key end

     0   :  { %8 = vsyncpa [#allocation3], 0  ;;  %s411_s0 = inlined_call_operand.hbm [shape: f32[16,128], index: 0, kind: input, shape index: {}]   ;;  %s412_s1 = inlined_call_operand.hbm [shape: f32[128,256], index: 1, kind: input, shape index: {}]   ;;  %s413_s2 = inlined_call_operand.vmem [shape: f32[1,256], index: 2, kind: input, shape index: {}]   ;;  %s414_s3 = inlined_call_operand.hbm [shape: f32[16,128], index: 3, kind: output, shape index: {}]  }
   0x1   :  { %9 = vsyncpa [#allocation6], 0 }
   0x2   :  { %10 = vsyncpa [#allocation4], 0  ;;  %s338_s12 = smov [#allocation2]   ;;  %s266_s16 = scalar_lea.hbm %s411_s0, 256 }
   0x3   :  { %s16_s13 = sshll.u32 %s338_s12, 4  ;;  %p267_p0 = scmp.ne.s32.totalorder %s411_s0, %s266_s16  ;;  %s17_s13 = int_to_ptr.vmem [resolvable:$true] %s16_s13 }
   0x4   :  { %p270_p1 = scmp.lt.u32.totalorder %s266_s16, %s411_s0 }
   0x6   :  { %p272_p2 = pnand %p270_p1, %p267_p0 }
   0x8   :  { %275 = shalt.err (!%p272_p2)
}
   0x9   :  { %s276_s21 = scalar_lea.vmem %s17_s13, 256  ;;  %p281_p4 = scmp.lt.s32.totalorder %s17_s13, %s17_s13 }
   0xa   :  { %p277_p3 = scmp.ne.s32.totalorder %s17_s13, %s276_s21  ;;  %p282_p5 = scmp.lt.s32.totalorder %s276_s21, %s276_s21 }
   0xc   :  { %p283_p6 = por %p282_p5, %p281_p4 }
   0xe   :  { %p284_p7 = pnand %p283_p6, %p277_p3 }
  0x10   :  { %287 = shalt.err (!%p284_p7)
}
  0x11   :  { %s339_s22 = smov 128   ;;  %s340_s23 = smov 8  }
  0x12   :  { %22 = dma.hbm_to_vmem [thread:$0]  %s411_s0, 256, %s17_s13, [#allocation3], %s339_s22, %s339_s22, %s340_s23  }
  0x13   :  { %s341_s26 = smov [#allocation5]   ;;  %s288_s30 = scalar_lea.hbm %s412_s1, 4096 }
  0x14   :  { %s28_s27 = sshll.u32 %s341_s26, 4  ;;  %p289_p8 = scmp.ne.s32.totalorder %s412_s1, %s288_s30  ;;  %s29_s27 = int_to_ptr.vmem [resolvable:$true] %s28_s27 }
  0x15   :  { %p292_p9 = scmp.lt.u32.totalorder %s288_s30, %s412_s1 }
  0x17   :  { %p294_p10 = pnand %p292_p9, %p289_p8 }
  0x19   :  { %297 = shalt.err (!%p294_p10)
}
  0x1a   :  { %s298_s8 = scalar_lea.vmem %s29_s27, 4096  ;;  %p303_p12 = scmp.lt.s32.totalorder %s29_s27, %s29_s27 }
  0x1b   :  { %p299_p11 = scmp.ne.s32.totalorder %s29_s27, %s298_s8  ;;  %p304_p13 = scmp.lt.s32.totalorder %s298_s8, %s298_s8 }
  0x1d   :  { %p305_p0 = por %p304_p13, %p303_p12 }
  0x1f   :  { %p306_p1 = pnand %p305_p0, %p299_p11 }
  0x21   :  { %309 = shalt.err (!%p306_p1)
}
  0x22   :  { %s342_s0 = smov 256   ;;  %s343_s9 = smov 16  }
  0x23   :  { %34 = dma.hbm_to_vmem [thread:$0]  %s412_s1, 4096, %s29_s27, [#allocation6], %s342_s0, %s342_s0, %s343_s9  }
  0x24   :  { %332 = dma.done.wait [#allocation3], 256  }
  0x25   :  { %333 = vsyncadd [#allocation3], 4294967040 }
  0x26   :  { %334 = dma.done.wait [#allocation6], 4096  }
  0x27   :  { %335 = vsyncadd [#allocation6], 4294963200  ;;  %v344_v0 = vmov 0.0   ;;  %v46_v1 = vld [vmem:[#allocation5 + $0x8] sm:$0xff]  ;;  %v48_v2 = vld [vmem:[#allocation5 + $0x18] sm:$0xff]  ;;  %v79_v51 = vlaneseq }
  0x28   :  { %153 = vmatprep.mubr.f32.mxu0 %v344_v0  ;;  %159 = vmatprep.mubr.f32.mxu1 %v344_v0  ;;  %v45_v3 = vld [vmem:[#allocation5] sm:$0xff]  ;;  %v202_v4 = vpack.c.bf16 %v48_v2, %v46_v1  ;;  %v47_v5 = vld [vmem:[#allocation5 + $0x10] sm:$0xff]  ;;  %v50_v6 = vld [vmem:[#allocation5 + $0x28] sm:$0xff] }
  0x29   :  { %v52_v7 = vld [vmem:[#allocation5 + $0x38] sm:$0xff]  ;;  %v204_v8 = vpack.c.bf16 %v47_v5, %v45_v3  ;;  %v49_v10 = vld [vmem:[#allocation5 + $0x20] sm:$0xff]  ;;  %v51_v11 = vld [vmem:[#allocation5 + $0x30] sm:$0xff]  ;;  %v80_v52 = vshrl.u32 %v79_v51, 7 }
  0x2a   :  { %v206_v9 = vpack.c.bf16 %v52_v7, %v50_v6  ;;  %v54_v12 = vld [vmem:[#allocation5 + $0x48] sm:$0xff]  ;;  %203 = vmatprep.subr.bf16.mxu0 %v202_v4  ;;  %234 = vmatprep.subr.bf16.mxu1 %v202_v4  ;;  %v56_v13 = vld [vmem:[#allocation5 + $0x58] sm:$0xff]  ;;  %v208_v14 = vpack.c.bf16 %v51_v11, %v49_v10  ;;  %v53_v16 = vld [vmem:[#allocation5 + $0x40] sm:$0xff] }
  0x2b   :  { %205 = vmatpush1.bf16.msra.mxu0 %v204_v8  ;;  %242 = vmatpush1.bf16.msra.mxu1 %v204_v8  ;;  %v210_v15 = vpack.c.bf16 %v56_v13, %v54_v12  ;;  %v55_v17 = vld [vmem:[#allocation5 + $0x50] sm:$0xff]  ;;  %v58_v18 = vld [vmem:[#allocation5 + $0x68] sm:$0xff]  ;;  %v60_v19 = vld [vmem:[#allocation5 + $0x78] sm:$0xff]  ;;  %v81_v53 = vsub.s32 0, %v80_v52  ;;  %v85_v4 = vsub.s32 1, %v80_v52 }
  0x2c   :  { %207 = vmatprep.subr.bf16.mxu0 %v206_v9  ;;  %235 = vmatprep.subr.bf16.mxu1 %v206_v9  ;;  %v212_v20 = vpack.c.bf16 %v55_v17, %v53_v16  ;;  %v214_v21 = vpack.c.bf16 %v60_v19, %v58_v18  ;;  %v57_v22 = vld [vmem:[#allocation5 + $0x60] sm:$0xff]  ;;  %v59_v23 = vld [vmem:[#allocation5 + $0x70] sm:$0xff]  ;;  %v62_v24 = vld [vmem:[#allocation5 + $0x88] sm:$0xff] }
  0x2d   :  { %v64_v25 = vld [vmem:[#allocation5 + $0x98] sm:$0xff]  ;;  %v216_v26 = vpack.c.bf16 %v59_v23, %v57_v22  ;;  %v61_v28 = vld [vmem:[#allocation5 + $0x80] sm:$0xff]  ;;  %v63_v29 = vld [vmem:[#allocation5 + $0x90] sm:$0xff] }
  0x2e   :  { %v218_v27 = vpack.c.bf16 %v64_v25, %v62_v24  ;;  %v66_v30 = vld [vmem:[#allocation5 + $0xa8] sm:$0xff]  ;;  %v68_v31 = vld [vmem:[#allocation5 + $0xb8] sm:$0xff]  ;;  %v220_v32 = vpack.c.bf16 %v63_v29, %v61_v28  ;;  %v65_v34 = vld [vmem:[#allocation5 + $0xa0] sm:$0xff] }
  0x2f   :  { %209 = vmatpush1.bf16.msra.mxu0 %v208_v14  ;;  %243 = vmatpush1.bf16.msra.mxu1 %v208_v14  ;;  %v222_v33 = vpack.c.bf16 %v68_v31, %v66_v30  ;;  %v67_v35 = vld [vmem:[#allocation5 + $0xb0] sm:$0xff]  ;;  %v70_v36 = vld [vmem:[#allocation5 + $0xc8] sm:$0xff]  ;;  %v72_v37 = vld [vmem:[#allocation5 + $0xd8] sm:$0xff] }
  0x30   :  { %211 = vmatprep.subr.bf16.mxu0 %v210_v15  ;;  %236 = vmatprep.subr.bf16.mxu1 %v210_v15  ;;  %v224_v38 = vpack.c.bf16 %v67_v35, %v65_v34  ;;  %v226_v39 = vpack.c.bf16 %v72_v37, %v70_v36  ;;  %v69_v40 = vld [vmem:[#allocation5 + $0xc0] sm:$0xff]  ;;  %v71_v41 = vld [vmem:[#allocation5 + $0xd0] sm:$0xff]  ;;  %v74_v42 = vld [vmem:[#allocation5 + $0xe8] sm:$0xff] }
  0x31   :  { %v76_v43 = vld [vmem:[#allocation5 + $0xf8] sm:$0xff]  ;;  %v228_v44 = vpack.c.bf16 %v71_v41, %v69_v40  ;;  %v73_v46 = vld [vmem:[#allocation5 + $0xe0] sm:$0xff]  ;;  %v75_v47 = vld [vmem:[#allocation5 + $0xf0] sm:$0xff] }
  0x32   :  { %v230_v45 = vpack.c.bf16 %v76_v43, %v74_v42  ;;  %v232_v48 = vpack.c.bf16 %v75_v47, %v73_v46  ;;  %v43_v49 = vld [vmem:[#allocation2] sm:$0xff]  ;;  %v44_v50 = vld [vmem:[#allocation2 + $0x8] sm:$0xff] }
  0x33   :  { %213 = vmatpush1.bf16.msra.mxu0 %v212_v20  ;;  %244 = vmatpush1.bf16.msra.mxu1 %v212_v20  ;;  %v77_v54 = vld [vmem:[%s413_s2] sm:$0x3]  ;;  %s345_s2 = smov [#allocation7]  }
  0x34   :  { %215 = vmatprep.subr.bf16.mxu0 %v214_v21  ;;  %237 = vmatprep.subr.bf16.mxu1 %v214_v21  ;;  %v82_v55 = vrot.slane %v77_v54, %v81_v53  ;;  %v86_v5 = vrot.slane %v77_v54, %v85_v4  ;;  %s187_s13 = sshll.u32 %s345_s2, 4  ;;  %s188_s13 = int_to_ptr.vmem [resolvable:$true] %s187_s13 }
  0x35   :  { %s310_s14 = scalar_lea.vmem %s188_s13, 256  ;;  %p315_p3 = scmp.lt.s32.totalorder %s188_s13, %s188_s13 }
  0x36   :  { %p311_p2 = scmp.ne.s32.totalorder %s188_s13, %s310_s14  ;;  %p316_p4 = scmp.lt.s32.totalorder %s310_s14, %s310_s14 }
  0x37   :  { %217 = vmatpush1.bf16.msra.mxu0 %v216_v26  ;;  %245 = vmatpush1.bf16.msra.mxu1 %v216_v26 }
  0x38   :  { %219 = vmatprep.subr.bf16.mxu0 %v218_v27  ;;  %238 = vmatprep.subr.bf16.mxu1 %v218_v27  ;;  %p317_p5 = por %p316_p4, %p315_p3 }
  0x3a   :  { %p318_p6 = pnand %p317_p5, %p311_p2 }
  0x3b   :  { %221 = vmatpush1.bf16.msra.mxu0 %v220_v32  ;;  %246 = vmatpush1.bf16.msra.mxu1 %v220_v32 }
  0x3c   :  { %223 = vmatprep.subr.bf16.mxu0 %v222_v33  ;;  %239 = vmatprep.subr.bf16.mxu1 %v222_v33 }
  0x3f   :  { %225 = vmatpush1.bf16.msra.mxu0 %v224_v38  ;;  %247 = vmatpush1.bf16.msra.mxu1 %v224_v38 }
  0x40   :  { %227 = vmatprep.subr.bf16.mxu0 %v226_v39  ;;  %240 = vmatprep.subr.bf16.mxu1 %v226_v39 }
  0x43   :  { %229 = vmatpush1.bf16.msra.mxu0 %v228_v44  ;;  %248 = vmatpush1.bf16.msra.mxu1 %v228_v44 }
  0x44   :  { %231 = vmatprep.subr.bf16.mxu0 %v230_v45  ;;  %241 = vmatprep.subr.bf16.mxu1 %v230_v45 }
  0x47   :  { %233 = vmatpush1.bf16.msra.mxu0 %v232_v48  ;;  %249 = vmatpush1.bf16.msra.mxu1 %v232_v48 }
  0x4a   :  { %154 = vmatmul.mubr.f32.vlgmr.msra.gmra.mrb[0].mxu0 %v43_v49  ;;  %160 = vmatmul.mubr.f32.vlgmr.msra.gmra.mrb[0].mxu1 %v44_v50 }
 0x11d   :  { %v155_v56 = vpop.f32.mrb[0].mxu0  ;;  %v161_v57 = vpop.f32.mrb[0].mxu1 }
 0x11e   :  { %v156_v58 = vadd.f32 %v155_v56, %v82_v55  ;;  %v162_v59 = vadd.f32 %v161_v57, %v82_v55  ;;  %v157_v60 = vpop.f32.mrb[1].mxu0  ;;  %v163_v61 = vpop.f32.mrb[1].mxu1 }
 0x11f   :  { %v158_v6 = vadd.f32 %v157_v60, %v86_v5  ;;  %v164_v8 = vadd.f32 %v163_v61, %v86_v5 }
 0x120   :  { %v200_v62 = vmul.f32 -1.442695, %v156_v58  ;;  %v201_v63 = vmul.f32 -1.442695, %v162_v59 }
 0x122   :  { %258 = vpow2.f32 %v200_v62 }
 0x123   :  { %260 = vpow2.f32 %v201_v63 }
 0x12c   :  { %v259_v0 = vpop.eup %258 }
 0x12d   :  { %v261_v1 = vpop.eup %260  ;;  %v172_v2 = vadd.f32 1.0, %v259_v0 }
 0x12e   :  { %v173_v3 = vadd.f32 1.0, %v261_v1 }
 0x12f   :  { %262 = vrcp.f32 %v172_v2 }
 0x130   :  { %264 = vrcp.f32 %v173_v3 }
 0x139   :  { %v263_v7 = vpop.eup %262 }
 0x13a   :  { %v265_v9 = vpop.eup %264  ;;  %v178_v10 = vmul.f32 %v263_v7, %v158_v6 }
 0x13b   :  { %v179_v11 = vmul.f32 %v265_v9, %v164_v8 }
 0x13c   :  { %180 = vst [vmem:[#allocation7] sm:$0xff] %v178_v10 }
 0x13d   :  { %181 = vst [vmem:[#allocation7 + $0x8] sm:$0xff] %v179_v11 }
 0x13e   :  { %321 = shalt.err (!%p318_p6)
}
 0x13f   :  { %s322_s17 = scalar_lea.hbm %s414_s3, 256 }
 0x140   :  { %p323_p7 = scmp.ne.s32.totalorder %s414_s3, %s322_s17  ;;  %p326_p8 = scmp.lt.u32.totalorder %s322_s17, %s414_s3 }
 0x142   :  { %p328_p9 = pnand %p326_p8, %p323_p7 }
 0x144   :  { %331 = shalt.err (!%p328_p9)
}
 0x145   :  { %193 = dma.vmem_to_hbm [thread:$0]  %s188_s13, 256, %s414_s3, [#allocation4], %s339_s22, %s339_s22, %s340_s23  }
 0x146   :  { %336 = dma.done.wait [#allocation4], 256  }
 0x147   :  { %337 = vsyncadd [#allocation4], 4294967040 }
 0x148   :  { %197 = vsyncpa [#allocation3], 1 }
 0x149   :  { %198 = vsyncpa [#allocation6], 1 }
 0x14a   :  { %199 = vsyncpa [#allocation4], 1 }

// kernel: tpu_custom_call.1
= control target key start
LH: loop header
LB: loop body
LE: loop exit
PB: predicated region body
PF: predicated region fallthrough
CT: control target
= control target key end

     0   :  { %8 = vsyncpa [#allocation3], 0  ;;  %s411_s0 = inlined_call_operand.hbm [shape: f32[16,128], index: 0, kind: input, shape index: {}]   ;;  %s412_s1 = inlined_call_operand.hbm [shape: f32[128,256], index: 1, kind: input, shape index: {}]   ;;  %s413_s2 = inlined_call_operand.vmem [shape: f32[1,256], index: 2, kind: input, shape index: {}]   ;;  %s414_s3 = inlined_call_operand.hbm [shape: f32[16,128], index: 3, kind: output, shape index: {}]  }
   0x1   :  { %9 = vsyncpa [#allocation6], 0 }
   0x2   :  { %10 = vsyncpa [#allocation4], 0  ;;  %s338_s12 = smov [#allocation2]   ;;  %s266_s16 = scalar_lea.hbm %s411_s0, 256 }
   0x3   :  { %s16_s13 = sshll.u32 %s338_s12, 4  ;;  %p267_p0 = scmp.ne.s32.totalorder %s411_s0, %s266_s16  ;;  %s17_s13 = int_to_ptr.vmem [resolvable:$true] %s16_s13 }
   0x4   :  { %p270_p1 = scmp.lt.u32.totalorder %s266_s16, %s411_s0 }
   0x6   :  { %p272_p2 = pnand %p270_p1, %p267_p0 }
   0x8   :  { %275 = shalt.err (!%p272_p2)
}
   0x9   :  { %s276_s21 = scalar_lea.vmem %s17_s13, 256  ;;  %p281_p4 = scmp.lt.s32.totalorder %s17_s13, %s17_s13 }
   0xa   :  { %p277_p3 = scmp.ne.s32.totalorder %s17_s13, %s276_s21  ;;  %p282_p5 = scmp.lt.s32.totalorder %s276_s21, %s276_s21 }
   0xc   :  { %p283_p6 = por %p282_p5, %p281_p4 }
   0xe   :  { %p284_p7 = pnand %p283_p6, %p277_p3 }
  0x10   :  { %287 = shalt.err (!%p284_p7)
}
  0x11   :  { %s339_s22 = smov 128   ;;  %s340_s23 = smov 8  }
  0x12   :  { %22 = dma.hbm_to_vmem [thread:$0]  %s411_s0, 256, %s17_s13, [#allocation3], %s339_s22, %s339_s22, %s340_s23  }
  0x13   :  { %s341_s26 = smov [#allocation5]   ;;  %s288_s30 = scalar_lea.hbm %s412_s1, 4096 }
  0x14   :  { %s28_s27 = sshll.u32 %s341_s26, 4  ;;  %p289_p8 = scmp.ne.s32.totalorder %s412_s1, %s288_s30  ;;  %s29_s27 = int_to_ptr.vmem [resolvable:$true] %s28_s27 }
  0x15   :  { %p292_p9 = scmp.lt.u32.totalorder %s288_s30, %s412_s1 }
  0x17   :  { %p294_p10 = pnand %p292_p9, %p289_p8 }
  0x19   :  { %297 = shalt.err (!%p294_p10)
}
  0x1a   :  { %s298_s8 = scalar_lea.vmem %s29_s27, 4096  ;;  %p303_p12 = scmp.lt.s32.totalorder %s29_s27, %s29_s27 }
  0x1b   :  { %p299_p11 = scmp.ne.s32.totalorder %s29_s27, %s298_s8  ;;  %p304_p13 = scmp.lt.s32.totalorder %s298_s8, %s298_s8 }
  0x1d   :  { %p305_p0 = por %p304_p13, %p303_p12 }
  0x1f   :  { %p306_p1 = pnand %p305_p0, %p299_p11 }
  0x21   :  { %309 = shalt.err (!%p306_p1)
}
  0x22   :  { %s342_s0 = smov 256   ;;  %s343_s9 = smov 16  }
  0x23   :  { %34 = dma.hbm_to_vmem [thread:$0]  %s412_s1, 4096, %s29_s27, [#allocation6], %s342_s0, %s342_s0, %s343_s9  }
  0x24   :  { %332 = dma.done.wait [#allocation3], 256  }
  0x25   :  { %333 = vsyncadd [#allocation3], 4294967040 }
  0x26   :  { %334 = dma.done.wait [#allocation6], 4096  }
  0x27   :  { %335 = vsyncadd [#allocation6], 4294963200  ;;  %v344_v0 = vmov 0.0   ;;  %v46_v1 = vld [vmem:[#allocation5 + $0x8] sm:$0xff]  ;;  %v48_v2 = vld [vmem:[#allocation5 + $0x18] sm:$0xff]  ;;  %v79_v51 = vlaneseq }
  0x28   :  { %153 = vmatprep.mubr.f32.mxu0 %v344_v0  ;;  %159 = vmatprep.mubr.f32.mxu1 %v344_v0  ;;  %v45_v3 = vld [vmem:[#allocation5] sm:$0xff]  ;;  %v202_v4 = vpack.c.bf16 %v48_v2, %v46_v1  ;;  %v47_v5 = vld [vmem:[#allocation5 + $0x10] sm:$0xff]  ;;  %v50_v6 = vld [vmem:[#allocation5 + $0x28] sm:$0xff] }
  0x29   :  { %v52_v7 = vld [vmem:[#allocation5 + $0x38] sm:$0xff]  ;;  %v204_v8 = vpack.c.bf16 %v47_v5, %v45_v3  ;;  %v49_v10 = vld [vmem:[#allocation5 + $0x20] sm:$0xff]  ;;  %v51_v11 = vld [vmem:[#allocation5 + $0x30] sm:$0xff]  ;;  %v80_v52 = vshrl.u32 %v79_v51, 7 }
  0x2a   :  { %v206_v9 = vpack.c.bf16 %v52_v7, %v50_v6  ;;  %v54_v12 = vld [vmem:[#allocation5 + $0x48] sm:$0xff]  ;;  %203 = vmatprep.subr.bf16.mxu0 %v202_v4  ;;  %234 = vmatprep.subr.bf16.mxu1 %v202_v4  ;;  %v56_v13 = vld [vmem:[#allocation5 + $0x58] sm:$0xff]  ;;  %v208_v14 = vpack.c.bf16 %v51_v11, %v49_v10  ;;  %v53_v16 = vld [vmem:[#allocation5 + $0x40] sm:$0xff] }
  0x2b   :  { %205 = vmatpush1.bf16.msra.mxu0 %v204_v8  ;;  %242 = vmatpush1.bf16.msra.mxu1 %v204_v8  ;;  %v210_v15 = vpack.c.bf16 %v56_v13, %v54_v12  ;;  %v55_v17 = vld [vmem:[#allocation5 + $0x50] sm:$0xff]  ;;  %v58_v18 = vld [vmem:[#allocation5 + $0x68] sm:$0xff]  ;;  %v60_v19 = vld [vmem:[#allocation5 + $0x78] sm:$0xff]  ;;  %v81_v53 = vsub.s32 0, %v80_v52  ;;  %v85_v4 = vsub.s32 1, %v80_v52 }
  0x2c   :  { %207 = vmatprep.subr.bf16.mxu0 %v206_v9  ;;  %235 = vmatprep.subr.bf16.mxu1 %v206_v9  ;;  %v212_v20 = vpack.c.bf16 %v55_v17, %v53_v16  ;;  %v214_v21 = vpack.c.bf16 %v60_v19, %v58_v18  ;;  %v57_v22 = vld [vmem:[#allocation5 + $0x60] sm:$0xff]  ;;  %v59_v23 = vld [vmem:[#allocation5 + $0x70] sm:$0xff]  ;;  %v62_v24 = vld [vmem:[#allocation5 + $0x88] sm:$0xff] }
  0x2d   :  { %v64_v25 = vld [vmem:[#allocation5 + $0x98] sm:$0xff]  ;;  %v216_v26 = vpack.c.bf16 %v59_v23, %v57_v22  ;;  %v61_v28 = vld [vmem:[#allocation5 + $0x80] sm:$0xff]  ;;  %v63_v29 = vld [vmem:[#allocation5 + $0x90] sm:$0xff] }
  0x2e   :  { %v218_v27 = vpack.c.bf16 %v64_v25, %v62_v24  ;;  %v66_v30 = vld [vmem:[#allocation5 + $0xa8] sm:$0xff]  ;;  %v68_v31 = vld [vmem:[#allocation5 + $0xb8] sm:$0xff]  ;;  %v220_v32 = vpack.c.bf16 %v63_v29, %v61_v28  ;;  %v65_v34 = vld [vmem:[#allocation5 + $0xa0] sm:$0xff] }
  0x2f   :  { %209 = vmatpush1.bf16.msra.mxu0 %v208_v14  ;;  %243 = vmatpush1.bf16.msra.mxu1 %v208_v14  ;;  %v222_v33 = vpack.c.bf16 %v68_v31, %v66_v30  ;;  %v67_v35 = vld [vmem:[#allocation5 + $0xb0] sm:$0xff]  ;;  %v70_v36 = vld [vmem:[#allocation5 + $0xc8] sm:$0xff]  ;;  %v72_v37 = vld [vmem:[#allocation5 + $0xd8] sm:$0xff] }
  0x30   :  { %211 = vmatprep.subr.bf16.mxu0 %v210_v15  ;;  %236 = vmatprep.subr.bf16.mxu1 %v210_v15  ;;  %v224_v38 = vpack.c.bf16 %v67_v35, %v65_v34  ;;  %v226_v39 = vpack.c.bf16 %v72_v37, %v70_v36  ;;  %v69_v40 = vld [vmem:[#allocation5 + $0xc0] sm:$0xff]  ;;  %v71_v41 = vld [vmem:[#allocation5 + $0xd0] sm:$0xff]  ;;  %v74_v42 = vld [vmem:[#allocation5 + $0xe8] sm:$0xff] }
  0x31   :  { %v76_v43 = vld [vmem:[#allocation5 + $0xf8] sm:$0xff]  ;;  %v228_v44 = vpack.c.bf16 %v71_v41, %v69_v40  ;;  %v73_v46 = vld [vmem:[#allocation5 + $0xe0] sm:$0xff]  ;;  %v75_v47 = vld [vmem:[#allocation5 + $0xf0] sm:$0xff] }
  0x32   :  { %v230_v45 = vpack.c.bf16 %v76_v43, %v74_v42  ;;  %v232_v48 = vpack.c.bf16 %v75_v47, %v73_v46  ;;  %v43_v49 = vld [vmem:[#allocation2] sm:$0xff]  ;;  %v44_v50 = vld [vmem:[#allocation2 + $0x8] sm:$0xff] }
  0x33   :  { %213 = vmatpush1.bf16.msra.mxu0 %v212_v20  ;;  %244 = vmatpush1.bf16.msra.mxu1 %v212_v20  ;;  %v77_v54 = vld [vmem:[%s413_s2] sm:$0x3]  ;;  %s345_s2 = smov [#allocation7]  }
  0x34   :  { %215 = vmatprep.subr.bf16.mxu0 %v214_v21  ;;  %237 = vmatprep.subr.bf16.mxu1 %v214_v21  ;;  %v82_v55 = vrot.slane %v77_v54, %v81_v53  ;;  %v86_v5 = vrot.slane %v77_v54, %v85_v4  ;;  %s187_s13 = sshll.u32 %s345_s2, 4  ;;  %s188_s13 = int_to_ptr.vmem [resolvable:$true] %s187_s13 }
  0x35   :  { %s310_s14 = scalar_lea.vmem %s188_s13, 256  ;;  %p315_p3 = scmp.lt.s32.totalorder %s188_s13, %s188_s13 }
  0x36   :  { %p311_p2 = scmp.ne.s32.totalorder %s188_s13, %s310_s14  ;;  %p316_p4 = scmp.lt.s32.totalorder %s310_s14, %s310_s14 }
  0x37   :  { %217 = vmatpush1.bf16.msra.mxu0 %v216_v26  ;;  %245 = vmatpush1.bf16.msra.mxu1 %v216_v26 }
  0x38   :  { %219 = vmatprep.subr.bf16.mxu0 %v218_v27  ;;  %238 = vmatprep.subr.bf16.mxu1 %v218_v27  ;;  %p317_p5 = por %p316_p4, %p315_p3 }
  0x3a   :  { %p318_p6 = pnand %p317_p5, %p311_p2 }
  0x3b   :  { %221 = vmatpush1.bf16.msra.mxu0 %v220_v32  ;;  %246 = vmatpush1.bf16.msra.mxu1 %v220_v32 }
  0x3c   :  { %223 = vmatprep.subr.bf16.mxu0 %v222_v33  ;;  %239 = vmatprep.subr.bf16.mxu1 %v222_v33 }
  0x3f   :  { %225 = vmatpush1.bf16.msra.mxu0 %v224_v38  ;;  %247 = vmatpush1.bf16.msra.mxu1 %v224_v38 }
  0x40   :  { %227 = vmatprep.subr.bf16.mxu0 %v226_v39  ;;  %240 = vmatprep.subr.bf16.mxu1 %v226_v39 }
  0x43   :  { %229 = vmatpush1.bf16.msra.mxu0 %v228_v44  ;;  %248 = vmatpush1.bf16.msra.mxu1 %v228_v44 }
  0x44   :  { %231 = vmatprep.subr.bf16.mxu0 %v230_v45  ;;  %241 = vmatprep.subr.bf16.mxu1 %v230_v45 }
  0x47   :  { %233 = vmatpush1.bf16.msra.mxu0 %v232_v48  ;;  %249 = vmatpush1.bf16.msra.mxu1 %v232_v48 }
  0x4a   :  { %154 = vmatmul.mubr.f32.vlgmr.msra.gmra.mrb[0].mxu0 %v43_v49  ;;  %160 = vmatmul.mubr.f32.vlgmr.msra.gmra.mrb[0].mxu1 %v44_v50 }
 0x11d   :  { %v155_v56 = vpop.f32.mrb[0].mxu0  ;;  %v161_v57 = vpop.f32.mrb[0].mxu1 }
 0x11e   :  { %v156_v58 = vadd.f32 %v155_v56, %v82_v55  ;;  %v162_v59 = vadd.f32 %v161_v57, %v82_v55  ;;  %v157_v60 = vpop.f32.mrb[1].mxu0  ;;  %v163_v61 = vpop.f32.mrb[1].mxu1 }
 0x11f   :  { %v158_v6 = vadd.f32 %v157_v60, %v86_v5  ;;  %v164_v8 = vadd.f32 %v163_v61, %v86_v5 }
 0x120   :  { %v200_v62 = vmul.f32 -1.442695, %v156_v58  ;;  %v201_v63 = vmul.f32 -1.442695, %v162_v59 }
 0x122   :  { %258 = vpow2.f32 %v200_v62 }
 0x123   :  { %260 = vpow2.f32 %v201_v63 }
 0x12c   :  { %v259_v0 = vpop.eup %258 }
 0x12d   :  { %v261_v1 = vpop.eup %260  ;;  %v172_v2 = vadd.f32 1.0, %v259_v0 }
 0x12e   :  { %v173_v3 = vadd.f32 1.0, %v261_v1 }
 0x12f   :  { %262 = vrcp.f32 %v172_v2 }
 0x130   :  { %264 = vrcp.f32 %v173_v3 }
 0x139   :  { %v263_v7 = vpop.eup %262 }
 0x13a   :  { %v265_v9 = vpop.eup %264  ;;  %v178_v10 = vmul.f32 %v263_v7, %v158_v6 }
 0x13b   :  { %v179_v11 = vmul.f32 %v265_v9, %v164_v8 }
 0x13c   :  { %180 = vst [vmem:[#allocation7] sm:$0xff] %v178_v10 }
 0x13d   :  { %181 = vst [vmem:[#allocation7 + $0x8] sm:$0xff] %v179_v11 }
 0x13e   :  { %321 = shalt.err (!%p318_p6)
}
 0x13f   :  { %s322_s17 = scalar_lea.hbm %s414_s3, 256 }
 0x140   :  { %p323_p7 = scmp.ne.s32.totalorder %s414_s3, %s322_s17  ;;  %p326_p8 = scmp.lt.u32.totalorder %s322_s17, %s414_s3 }
 0x142   :  { %p328_p9 = pnand %p326_p8, %p323_p7 }
 0x144   :  { %331 = shalt.err (!%p328_p9)
}
 0x145   :  { %193 = dma.vmem_to_hbm [thread:$0]  %s188_s13, 256, %s414_s3, [#allocation4], %s339_s22, %s339_s22, %s340_s23  }
 0x146   :  { %336 = dma.done.wait [#allocation4], 256  }
 0x147   :  { %337 = vsyncadd [#allocation4], 4294967040 }
 0x148   :  { %197 = vsyncpa [#allocation3], 1 }
 0x149   :  { %198 = vsyncpa [#allocation6], 1 }
 0x14a   :  { %199 = vsyncpa [#allocation4], 1 }

</bundles_post_ra>
